<compile_context>
chip_gen: v7x
topology: tpu7x:2x2x1
jax: 0.10.0
libtpu: 0.0.40
codegen_flags: <defaults>
</compile_context>

<pallas_src>
import jax
import jax.numpy as jnp
from jax.experimental import pallas as pl
from jax.experimental.pallas import tpu as pltpu


def triplet_loss_kernel(x1_ref, x2_ref, w_ref, b_ref, counts_ref, out_ref,
                        z1_acc, z2_acc):
    k = pl.program_id(0)
    nk = pl.num_programs(0)

    @pl.when(k == 0)
    def _():
        # Fold the encoder bias into the accumulator init (saves a [B, F]
        # VPU pass in the serial, un-hidden epilogue).
        bias = jnp.broadcast_to(b_ref[...], z1_acc.shape)
        z1_acc[...] = bias
        z2_acc[...] = bias

    # In-kernel bf16 cast (cheap VPU op hidden under the HBM stream of W);
    # the two x-streams share the same W K-tile, accumulation stays f32.
    w_bf = w_ref[...].astype(jnp.bfloat16)
    z1_acc[...] += jnp.dot(x1_ref[...].astype(jnp.bfloat16), w_bf,
                           preferred_element_type=jnp.float32)
    z2_acc[...] += jnp.dot(x2_ref[...].astype(jnp.bfloat16), w_bf,
                           preferred_element_type=jnp.float32)

    @pl.when(k == nk - 1)
    def _():
        z1 = z1_acc[...]                                        # [B, F] f32
        z2 = z2_acc[...]                                        # [B, F] f32

        # Positive term: -logsigmoid(sum_k z1*z2), numerically stable.
        s = jnp.sum(z1 * z2, axis=-1, keepdims=True)            # [B, 1]
        log_sig = jnp.minimum(s, 0.0) - jnp.log1p(jnp.exp(-jnp.abs(s)))
        pos = -log_sig                                          # [B, 1]

        # Negative term: sum_j <z1[m], z1[neg_idx[m, j]]>
        #              = sum_k z1[m, k] * (counts @ z1)[m, k]
        cz = jnp.dot(counts_ref[...], z1,
                     preferred_element_type=jnp.float32)        # [B, F]
        neg_sim = jnp.sum(cz * z1, axis=-1, keepdims=True)      # [B, 1]

        out_ref[0, 0] = jnp.mean(pos + neg_sim)


def triplet_loss(x1_flat, x2_flat, w, b, counts, *, k_tile=None,
                 vmem_budget_bytes=16 * 1024 * 1024):
    B, Din = x1_flat.shape
    Dw, F = w.shape
    assert Dw == Din, (Dw, Din)

    x1_flat = x1_flat.astype(jnp.float32)
    x2_flat = x2_flat.astype(jnp.float32)
    w = w.astype(jnp.float32)
    b2 = b.reshape(1, F).astype(jnp.float32)
    counts = counts.astype(jnp.float32)

    def working_set_bytes(kt):
        # Streamed inputs are double-buffered f32 (bf16 cast is in-kernel);
        # plus resident accumulators / small operands.
        return (2 * (2 * B * kt * 4)          # x1 + x2 K-tiles
                + 2 * (kt * F * 4)            # W K-tile
                + 2 * B * F * 4               # z1 / z2 accumulators
                + B * B * 4 + F * 4 + 8)      # counts, bias, output

    if k_tile is None:
        if working_set_bytes(Din) <= 4 * 1024 * 1024:
            # Whole problem fits comfortably in VMEM: one grid step,
            # full-extent blocks (exempt from (8,128)), no per-step overhead.
            k_tile = Din
        else:
            # Largest K tile (multiple of 128, capped at 4096) whose
            # double-buffered working set fits the budget; tiles >= 512 wide
            # approach HBM roofline and amortize ~0.35us/step grid overhead.
            k_tile = 128
            while (k_tile < 4096
                   and working_set_bytes(2 * k_tile) <= vmem_budget_bytes):
                k_tile *= 2

    if k_tile >= Din:
        k_tile = Din
        num_k = 1
    elif Din % k_tile == 0:
        num_k = Din // k_tile
    else:
        # Zero-pad the reduction axis so the pipelined grid survives on every
        # generation (no full-Din fallback that could blow v7x's 64 MiB VMEM);
        # zeros contribute nothing to the accumulation.
        num_k = pl.cdiv(Din, k_tile)
        pad = num_k * k_tile - Din
        x1_flat = jnp.pad(x1_flat, ((0, 0), (0, pad)))
        x2_flat = jnp.pad(x2_flat, ((0, 0), (0, pad)))
        w = jnp.pad(w, ((0, pad), (0, 0)))

    cost = pl.CostEstimate(
        flops=2 * (2 * B) * Din * F + 2 * B * B * F,
        transcendentals=2 * B,
        bytes_accessed=4 * (2 * B * Din + Din * F + F + B * B + 1),
    )

    out = pl.pallas_call(
        triplet_loss_kernel,
        out_shape=jax.ShapeDtypeStruct((1, 1), jnp.float32),
        grid=(num_k,),
        in_specs=[
            pl.BlockSpec((B, k_tile), lambda k: (0, k)),    # x1 K-tile
            pl.BlockSpec((B, k_tile), lambda k: (0, k)),    # x2 K-tile
            pl.BlockSpec((k_tile, F), lambda k: (k, 0)),    # W K-tile
            pl.BlockSpec((1, F), lambda k: (0, 0)),         # bias (resident)
            pl.BlockSpec((B, B), lambda k: (0, 0)),         # counts (resident)
        ],
        out_specs=pl.BlockSpec(memory_space=pltpu.MemorySpace.SMEM),
        scratch_shapes=[pltpu.VMEM((B, F), jnp.float32),    # z1 accumulator
                        pltpu.VMEM((B, F), jnp.float32)],   # z2 accumulator
        compiler_params=pltpu.CompilerParams(
            dimension_semantics=("arbitrary",),             # K is a reduction
            vmem_limit_bytes=max(32 * 1024 * 1024, vmem_budget_bytes),
        ),
        cost_estimate=cost,
    )(x1_flat, x2_flat, w, b2, counts)
    return out[0, 0]


if __name__ == "__main__":
    # Module config (small shapes): input_size=16, input_channels=4,
    # hidden_channels=32 (unused by synthesized encoder), feature_dim=32,
    # num_sample=10, batch=2.
    B, C, H, W_sp = 2, 4, 16, 16
    feature_dim = 32
    num_sample = 10
    Din = C * H * W_sp                                    # 1024

    key = jax.random.PRNGKey(0)
    k_x1, k_x2, k_w, k_idx = jax.random.split(key, 4)

    # NCHW inputs, flattened to [B, C*H*W] for the kernel.
    x1 = jax.random.normal(k_x1, (B, C, H, W_sp), dtype=jnp.float32)
    x2 = jax.random.normal(k_x2, (B, C, H, W_sp), dtype=jnp.float32)
    x1_flat = x1.reshape(B, Din)
    x2_flat = x2.reshape(B, Din)

    # Deterministic synthetic encoder parameters.
    w = (jax.random.normal(k_w, (Din, feature_dim), dtype=jnp.float32)
         * (1.0 / jnp.sqrt(Din)))
    b = jnp.zeros((feature_dim,), dtype=jnp.float32)

    # torch.randint equivalent (glue, outside the kernel), densified to counts.
    # TODO(synk): reference draws fresh negatives every forward; fixed key here.
    neg_idx = jax.random.randint(k_idx, (B, num_sample), 0, B)
    counts = jax.nn.one_hot(neg_idx, B, dtype=jnp.float32).sum(axis=1)  # [B, B]

    # Pure-JAX reference (self-consistent with the bf16-operand / f32-accum
    # MXU encoder used inside the kernel).
    z_ref = jnp.dot(
        jnp.concatenate([x1_flat, x2_flat], axis=0).astype(jnp.bfloat16),
        w.astype(jnp.bfloat16), preferred_element_type=jnp.float32) + b
    z1_r, z2_r = z_ref[:B], z_ref[B:]
    pos_ref = -jax.nn.log_sigmoid(jnp.sum(z1_r * z2_r, axis=-1))
    neg_sim_ref = jnp.einsum('mk,mjk->mj', z1_r, z1_r[neg_idx]).sum(-1)
    loss_ref = jnp.mean(pos_ref + neg_sim_ref)

    # 1) Default path at these shapes: whole problem in VMEM, single grid step.
    loss = triplet_loss(x1_flat, x2_flat, w, b, counts)
    jax.block_until_ready(loss)
    assert jnp.allclose(loss, loss_ref, rtol=1e-3, atol=1e-3), (loss, loss_ref)

    # 2) Exercise the K-gridded + zero-padded reduction path (384 ∤ 1024).
    loss_grid = triplet_loss(x1_flat, x2_flat, w, b, counts, k_tile=384)
    jax.block_until_ready(loss_grid)
    assert jnp.allclose(loss_grid, loss_ref, rtol=1e-3, atol=1e-3), (
        loss_grid, loss_ref)

    print("KERNEL_OK")
</pallas_src>

<mosaic_0001>
module attributes {stable_mosaic.version = 11 : i64} {
  func.func @triplet_loss_kernel(%arg0: i32, %arg1: memref<2x1024xf32, #tpu.memory_space<vmem>>, %arg2: memref<2x1024xf32, #tpu.memory_space<vmem>>, %arg3: memref<1024x32xf32, #tpu.memory_space<vmem>>, %arg4: memref<1x32xf32, #tpu.memory_space<vmem>>, %arg5: memref<2x2xf32, #tpu.memory_space<vmem>>, %arg6: memref<1x1xf32, #tpu.memory_space<smem>>, %arg7: memref<2x32xf32, #tpu.memory_space<vmem>>, %arg8: memref<2x32xf32, #tpu.memory_space<vmem>>) attributes {dimension_semantics = [#tpu.dimension_semantics<arbitrary>], iteration_bounds = array<i64: 1>, scalar_prefetch = 0 : i64, scratch_operands = 2 : i64, tpu.core_type = #tpu.core_type<tc>, window_params = [{transform_indices = @transform_0, window_bounds = array<i64: 2, 1024>}, {transform_indices = @transform_1, window_bounds = array<i64: 2, 1024>}, {transform_indices = @transform_2, window_bounds = array<i64: 1024, 32>}, {pipeline_mode = #tpu.pipeline_mode<synchronous>, transform_indices = @transform_3, window_bounds = array<i64: 1, 32>}, {pipeline_mode = #tpu.pipeline_mode<synchronous>, transform_indices = @transform_4, window_bounds = array<i64: 2, 2>}, {transform_indices = @transform_5, window_bounds = array<i64: 1, 1>}]} {
    %c0_i32 = arith.constant 0 : i32
    %0 = arith.cmpi eq, %arg0, %c0_i32 : i32
    %1 = arith.extui %0 : i1 to i32
    %c0_i32_0 = arith.constant 0 : i32
    %2 = arith.cmpi ne, %1, %c0_i32_0 : i32
    scf.if %2 {
      %c0_17 = arith.constant 0 : index
      %c0_18 = arith.constant 0 : index
      %20 = vector.load %arg4[%c0_17, %c0_18] : memref<1x32xf32, #tpu.memory_space<vmem>>, vector<1x32xf32>
      %21 = vector.shape_cast %20 : vector<1x32xf32> to vector<1x32xf32>
      %22 = vector.broadcast %21 : vector<1x32xf32> to vector<2x32xf32>
      %c0_19 = arith.constant 0 : index
      %c0_20 = arith.constant 0 : index
      %23 = vector.load %arg7[%c0_19, %c0_20] : memref<2x32xf32, #tpu.memory_space<vmem>>, vector<2x32xf32>
      tpu.vector_store %arg7[%c0_19, %c0_20], %22 {strides = array<i32>} : memref<2x32xf32, #tpu.memory_space<vmem>>, vector<2x32xf32>,
      %c0_21 = arith.constant 0 : index
      %c0_22 = arith.constant 0 : index
      %24 = vector.load %arg8[%c0_21, %c0_22] : memref<2x32xf32, #tpu.memory_space<vmem>>, vector<2x32xf32>
      tpu.vector_store %arg8[%c0_21, %c0_22], %22 {strides = array<i32>} : memref<2x32xf32, #tpu.memory_space<vmem>>, vector<2x32xf32>,
    } else {
    }
    %c0 = arith.constant 0 : index
    %c0_1 = arith.constant 0 : index
    %3 = vector.load %arg3[%c0, %c0_1] : memref<1024x32xf32, #tpu.memory_space<vmem>>, vector<1024x32xf32>
    %4 = arith.truncf %3 : vector<1024x32xf32> to vector<1024x32xbf16>
    %c0_2 = arith.constant 0 : index
    %c0_3 = arith.constant 0 : index
    %5 = vector.load %arg7[%c0_2, %c0_3] : memref<2x32xf32, #tpu.memory_space<vmem>>, vector<2x32xf32>
    %c0_4 = arith.constant 0 : index
    %c0_5 = arith.constant 0 : index
    %6 = vector.load %arg1[%c0_4, %c0_5] : memref<2x1024xf32, #tpu.memory_space<vmem>>, vector<2x1024xf32>
    %7 = arith.truncf %6 : vector<2x1024xf32> to vector<2x1024xbf16>
    %cst = arith.constant dense<0.000000e+00> : vector<2x32xf32>
    %8 = tpu.matmul %7, %4, %cst {dimension_numbers = #tpu.dot_dimension_numbers<[1], [0], [0], [1], [0, 0, 1, 1], [], []>} : vector<2x1024xbf16>, vector<1024x32xbf16>, vector<2x32xf32> -> vector<2x32xf32>
    %9 = arith.addf %5, %8 : vector<2x32xf32>
    %c0_6 = arith.constant 0 : index
    %c0_7 = arith.constant 0 : index
    %10 = vector.load %arg7[%c0_6, %c0_7] : memref<2x32xf32, #tpu.memory_space<vmem>>, vector<2x32xf32>
    tpu.vector_store %arg7[%c0_6, %c0_7], %9 {strides = array<i32>} : memref<2x32xf32, #tpu.memory_space<vmem>>, vector<2x32xf32>,
    %c0_8 = arith.constant 0 : index
    %c0_9 = arith.constant 0 : index
    %11 = vector.load %arg8[%c0_8, %c0_9] : memref<2x32xf32, #tpu.memory_space<vmem>>, vector<2x32xf32>
    %c0_10 = arith.constant 0 : index
    %c0_11 = arith.constant 0 : index
    %12 = vector.load %arg2[%c0_10, %c0_11] : memref<2x1024xf32, #tpu.memory_space<vmem>>, vector<2x1024xf32>
    %13 = arith.truncf %12 : vector<2x1024xf32> to vector<2x1024xbf16>
    %cst_12 = arith.constant dense<0.000000e+00> : vector<2x32xf32>
    %14 = tpu.matmul %13, %4, %cst_12 {dimension_numbers = #tpu.dot_dimension_numbers<[1], [0], [0], [1], [0, 0, 1, 1], [], []>} : vector<2x1024xbf16>, vector<1024x32xbf16>, vector<2x32xf32> -> vector<2x32xf32>
    %15 = arith.addf %11, %14 : vector<2x32xf32>
    %c0_13 = arith.constant 0 : index
    %c0_14 = arith.constant 0 : index
    %16 = vector.load %arg8[%c0_13, %c0_14] : memref<2x32xf32, #tpu.memory_space<vmem>>, vector<2x32xf32>
    tpu.vector_store %arg8[%c0_13, %c0_14], %15 {strides = array<i32>} : memref<2x32xf32, #tpu.memory_space<vmem>>, vector<2x32xf32>,
    %c0_i32_15 = arith.constant 0 : i32
    %17 = arith.cmpi eq, %arg0, %c0_i32_15 : i32
    %18 = arith.extui %17 : i1 to i32
    %c0_i32_16 = arith.constant 0 : i32
    %19 = arith.cmpi ne, %18, %c0_i32_16 : i32
    scf.if %19 {
      %c0_17 = arith.constant 0 : index
      %c0_18 = arith.constant 0 : index
      %20 = vector.load %arg7[%c0_17, %c0_18] : memref<2x32xf32, #tpu.memory_space<vmem>>, vector<2x32xf32>
      %c0_19 = arith.constant 0 : index
      %c0_20 = arith.constant 0 : index
      %21 = vector.load %arg8[%c0_19, %c0_20] : memref<2x32xf32, #tpu.memory_space<vmem>>, vector<2x32xf32>
      %22 = arith.mulf %20, %21 : vector<2x32xf32>
      %cst_21 = arith.constant dense<0.000000e+00> : vector<2xf32>
      %23 = vector.multi_reduction <add>, %22, %cst_21 [1] : vector<2x32xf32> to vector<2xf32>
      %24 = vector.shape_cast %23 : vector<2xf32> to vector<2x1xf32>
      %cst_22 = arith.constant 0.000000e+00 : f32
      %25 = vector.broadcast %cst_22 : f32 to vector<2x1xf32>
      %26 = arith.minimumf %24, %25 : vector<2x1xf32>
      %27 = math.absf %24 : vector<2x1xf32>
      %cst_23 = arith.constant 0.000000e+00 : f32
      %28 = vector.broadcast %cst_23 : f32 to vector<2x1xf32>
      %29 = arith.subf %28, %27 : vector<2x1xf32>
      %30 = math.exp %29 : vector<2x1xf32>
      %31 = math.log1p %30 : vector<2x1xf32>
      %32 = arith.subf %26, %31 : vector<2x1xf32>
      %cst_24 = arith.constant 0.000000e+00 : f32
      %33 = vector.broadcast %cst_24 : f32 to vector<2x1xf32>
      %34 = arith.subf %33, %32 : vector<2x1xf32>
      %c0_25 = arith.constant 0 : index
      %c0_26 = arith.constant 0 : index
      %35 = vector.load %arg5[%c0_25, %c0_26] : memref<2x2xf32, #tpu.memory_space<vmem>>, vector<2x2xf32>
      %cst_27 = arith.constant dense<0.000000e+00> : vector<2x32xf32>
      %36 = tpu.matmul %35, %20, %cst_27 {dimension_numbers = #tpu.dot_dimension_numbers<[1], [0], [0], [1], [0, 0, 1, 1], [], []>} : vector<2x2xf32>, vector<2x32xf32>, vector<2x32xf32> -> vector<2x32xf32>
      %37 = arith.mulf %36, %20 : vector<2x32xf32>
      %cst_28 = arith.constant dense<0.000000e+00> : vector<2xf32>
      %38 = vector.multi_reduction <add>, %37, %cst_28 [1] : vector<2x32xf32> to vector<2xf32>
      %39 = vector.shape_cast %38 : vector<2xf32> to vector<2x1xf32>
      %40 = arith.addf %34, %39 : vector<2x1xf32>
      %41 = vector.shape_cast %40 : vector<2x1xf32> to vector<1x2x1xf32>
      %cst_29 = arith.constant dense<0.000000e+00> : vector<1xf32>
      %42 = vector.multi_reduction <add>, %41, %cst_29 [1, 2] : vector<1x2x1xf32> to vector<1xf32>
      %43 = vector.shape_cast %42 : vector<1xf32> to vector<1x1x1xf32>
      %44 = vector.extract %43[0, 0, 0] : f32 from vector<1x1x1xf32>
      %cst_30 = arith.constant 2.000000e+00 : f32
      %45 = arith.divf %44, %cst_30 : f32
      %c0_31 = arith.constant 0 : index
      %c0_32 = arith.constant 0 : index
      %46 = memref.load %arg6[%c0_31, %c0_32] : memref<1x1xf32, #tpu.memory_space<smem>>
      memref.store %45, %arg6[%c0_31, %c0_32] : memref<1x1xf32, #tpu.memory_space<smem>>
    } else {
    }
    return
  }
  func.func @transform_0(%arg0: i32) -> (i32, i32) {
    %c0_i32 = arith.constant 0 : i32
    %c0_i32_0 = arith.constant 0 : i32
    return %c0_i32, %arg0 : i32, i32
  }
  func.func @transform_1(%arg0: i32) -> (i32, i32) {
    %c0_i32 = arith.constant 0 : i32
    %c0_i32_0 = arith.constant 0 : i32
    return %c0_i32, %arg0 : i32, i32
  }
  func.func @transform_2(%arg0: i32) -> (i32, i32) {
    %c0_i32 = arith.constant 0 : i32
    %c0_i32_0 = arith.constant 0 : i32
    return %arg0, %c0_i32 : i32, i32
  }
  func.func @transform_3(%arg0: i32) -> (i32, i32) {
    %c0_i32 = arith.constant 0 : i32
    %c0_i32_0 = arith.constant 0 : i32
    %c0_i32_1 = arith.constant 0 : i32
    return %c0_i32, %c0_i32_0 : i32, i32
  }
  func.func @transform_4(%arg0: i32) -> (i32, i32) {
    %c0_i32 = arith.constant 0 : i32
    %c0_i32_0 = arith.constant 0 : i32
    %c0_i32_1 = arith.constant 0 : i32
    return %c0_i32, %c0_i32_0 : i32, i32
  }
  func.func @transform_5(%arg0: i32) -> (i32, i32) {
    %c0_i32 = arith.constant 0 : i32
    %c0_i32_0 = arith.constant 0 : i32
    %c0_i32_1 = arith.constant 0 : i32
    return %c0_i32, %c0_i32_0 : i32, i32
  }
}

</mosaic_0001>

<bundles_post_ra>
// kernel: tpu_custom_call.1
= control target key start
LH: loop header
LB: loop body
LE: loop exit
PB: predicated region body
PF: predicated region fallthrough
CT: control target
= control target key end

     0   :  { %v1013_v47 = vmov 1983009808   ;;  %v237_v49 = vlaneseq  ;;  %s1757_s0 = inlined_call_operand.vmem [shape: f32[2,1024], index: 0, kind: input, shape index: {}]   ;;  %s1758_s1 = inlined_call_operand.vmem [shape: f32[2,1024], index: 1, kind: input, shape index: {}]   ;;  %s1759_s2 = inlined_call_operand.vmem [shape: f32[1024,32], index: 2, kind: input, shape index: {}]   ;;  %s1760_s3 = inlined_call_operand.vmem [shape: f32[1,32], index: 3, kind: input, shape index: {}]   ;;  %s1761_s4 = inlined_call_operand.vmem [shape: f32[2,2], index: 4, kind: input, shape index: {}]   ;;  %s1762_s5 = inlined_call_operand.hbm [shape: f32[1,1], index: 5, kind: output, shape index: {}]  }
   0x1   :  { %v52_v0 = vld [vmem:[%s1759_s2 + $0x80] sm:$0xff]  ;;  %v53_v1 = vld [vmem:[%s1759_s2 + $0x88] sm:$0xff]  ;;  %v54_v11 = vld [vmem:[%s1759_s2 + $0x90] sm:$0xff]  ;;  %v235_v48 = vunpack.c.l.s4 %v1013_v47 }
   0x2   :  { %v84_v2 = vld [vmem:[%s1759_s2 + $0x180] sm:$0xff]  ;;  %v1056_v3 = vpack.c.bf16 %v53_v1, %v52_v0  ;;  %v85_v4 = vld [vmem:[%s1759_s2 + $0x188] sm:$0xff]  ;;  %v55_v13 = vld [vmem:[%s1759_s2 + $0x98] sm:$0xff]  ;;  %v238_v0 = vshrl.u32 %v237_v49, 7 }
   0x3   :  { %v36_v5 = vld [vmem:[%s1759_s2] sm:$0xff]  ;;  %v37_v6 = vld [vmem:[%s1759_s2 + $0x8] sm:$0xff]  ;;  %v1067_v7 = vpack.c.bf16 %v85_v4, %v84_v2  ;;  %v86_v14 = vld [vmem:[%s1759_s2 + $0x190] sm:$0xff]  ;;  %v1094_v16 = vpack.c.bf16 %v55_v13, %v54_v11  ;;  %v236_v63 = vunpack.c.0.s8 %v235_v48 }
   0x4   :  { %v1069_v8 = vpack.c.bf16 %v37_v6, %v36_v5  ;;  %v68_v9 = vld [vmem:[%s1759_s2 + $0x100] sm:$0xff]  ;;  %v69_v10 = vld [vmem:[%s1759_s2 + $0x108] sm:$0xff]  ;;  %804 = vmatprep.subr.bf16.mxu0 %v1056_v3  ;;  %v87_v15 = vld [vmem:[%s1759_s2 + $0x198] sm:$0xff] }
   0x5   :  { %v1081_v12 = vpack.c.bf16 %v69_v10, %v68_v9  ;;  %826 = vmatprep.subr.bf16.mxu1 %v1067_v7  ;;  %v1096_v17 = vpack.c.bf16 %v87_v15, %v86_v14  ;;  %v38_v18 = vld [vmem:[%s1759_s2 + $0x10] sm:$0xff]  ;;  %v39_v19 = vld [vmem:[%s1759_s2 + $0x18] sm:$0xff]  ;;  %v56_v23 = vld [vmem:[%s1759_s2 + $0xa0] sm:$0xff] }
   0x6   :  { %805 = vmatpush3.bf16.msra.mxu0 %v1069_v8  ;;  %v70_v20 = vld [vmem:[%s1759_s2 + $0x110] sm:$0xff]  ;;  %v1108_v21 = vpack.c.bf16 %v39_v19, %v38_v18  ;;  %v71_v22 = vld [vmem:[%s1759_s2 + $0x118] sm:$0xff]  ;;  %v57_v24 = vld [vmem:[%s1759_s2 + $0xa8] sm:$0xff]  ;;  %v1259_v19 = vsub.s32 %v236_v63, %v238_v0 }
   0x7   :  { %827 = vmatpush3.bf16.msra.mxu1 %v1081_v12  ;;  %806 = vmatprep.subr.bf16.mxu0 %v1094_v16  ;;  %v1121_v25 = vpack.c.bf16 %v71_v22, %v70_v20  ;;  %v1123_v26 = vpack.c.bf16 %v57_v24, %v56_v23  ;;  %v88_v27 = vld [vmem:[%s1759_s2 + $0x1a0] sm:$0xff]  ;;  %v89_v28 = vld [vmem:[%s1759_s2 + $0x1a8] sm:$0xff]  ;;  %v58_v35 = vld [vmem:[%s1759_s2 + $0xb0] sm:$0xff] }
   0x8   :  { %828 = vmatprep.subr.bf16.mxu1 %v1096_v17  ;;  %v40_v29 = vld [vmem:[%s1759_s2 + $0x20] sm:$0xff]  ;;  %v1134_v30 = vpack.c.bf16 %v89_v28, %v88_v27  ;;  %v41_v31 = vld [vmem:[%s1759_s2 + $0x28] sm:$0xff]  ;;  %v59_v36 = vld [vmem:[%s1759_s2 + $0xb8] sm:$0xff] }
   0x9   :  { %v72_v32 = vld [vmem:[%s1759_s2 + $0x120] sm:$0xff]  ;;  %v73_v33 = vld [vmem:[%s1759_s2 + $0x128] sm:$0xff]  ;;  %v1146_v34 = vpack.c.bf16 %v41_v31, %v40_v29  ;;  %v90_v37 = vld [vmem:[%s1759_s2 + $0x1b0] sm:$0xff]  ;;  %v1161_v39 = vpack.c.bf16 %v59_v36, %v58_v35 }
   0xa   :  { %807 = vmatpush3.bf16.msra.mxu0 %v1108_v21  ;;  %v1159_v38 = vpack.c.bf16 %v73_v33, %v72_v32  ;;  %v91_v40 = vld [vmem:[%s1759_s2 + $0x1b8] sm:$0xff]  ;;  %v42_v41 = vld [vmem:[%s1759_s2 + $0x30] sm:$0xff]  ;;  %v60_v46 = vld [vmem:[%s1759_s2 + $0xc0] sm:$0xff] }
   0xb   :  { %829 = vmatpush3.bf16.msra.mxu1 %v1121_v25  ;;  %808 = vmatprep.subr.bf16.mxu0 %v1123_v26  ;;  %v43_v42 = vld [vmem:[%s1759_s2 + $0x38] sm:$0xff]  ;;  %v1173_v43 = vpack.c.bf16 %v91_v40, %v90_v37  ;;  %v74_v44 = vld [vmem:[%s1759_s2 + $0x130] sm:$0xff]  ;;  %v61_v50 = vld [vmem:[%s1759_s2 + $0xc8] sm:$0xff] }
   0xc   :  { %830 = vmatprep.subr.bf16.mxu1 %v1134_v30  ;;  %v75_v45 = vld [vmem:[%s1759_s2 + $0x138] sm:$0xff]  ;;  %v92_v51 = vld [vmem:[%s1759_s2 + $0x1c0] sm:$0xff]  ;;  %v93_v52 = vld [vmem:[%s1759_s2 + $0x1c8] sm:$0xff]  ;;  %v1194_v53 = vpack.c.bf16 %v43_v42, %v42_v41  ;;  %v1200_v55 = vpack.c.bf16 %v61_v50, %v60_v46 }
   0xd   :  { %v1198_v54 = vpack.c.bf16 %v75_v45, %v74_v44  ;;  %v44_v56 = vld [vmem:[%s1759_s2 + $0x40] sm:$0xff]  ;;  %v45_v57 = vld [vmem:[%s1759_s2 + $0x48] sm:$0xff]  ;;  %v1212_v59 = vpack.c.bf16 %v93_v52, %v92_v51  ;;  %v62_v61 = vld [vmem:[%s1759_s2 + $0xd0] sm:$0xff] }
   0xe   :  { %809 = vmatpush3.bf16.msra.mxu0 %v1146_v34  ;;  %v76_v58 = vld [vmem:[%s1759_s2 + $0x140] sm:$0xff]  ;;  %v77_v60 = vld [vmem:[%s1759_s2 + $0x148] sm:$0xff]  ;;  %v63_v62 = vld [vmem:[%s1759_s2 + $0xd8] sm:$0xff]  ;;  %v1230_v4 = vpack.c.bf16 %v45_v57, %v44_v56 }
   0xf   :  { %831 = vmatpush3.bf16.msra.mxu1 %v1159_v38  ;;  %810 = vmatprep.subr.bf16.mxu0 %v1161_v39  ;;  %v94_v1 = vld [vmem:[%s1759_s2 + $0x1d0] sm:$0xff]  ;;  %v95_v2 = vld [vmem:[%s1759_s2 + $0x1d8] sm:$0xff]  ;;  %v1234_v5 = vpack.c.bf16 %v77_v60, %v76_v58  ;;  %v1236_v6 = vpack.c.bf16 %v63_v62, %v62_v61  ;;  %v64_v15 = vld [vmem:[%s1759_s2 + $0xe0] sm:$0xff] }
  0x10   :  { %832 = vmatprep.subr.bf16.mxu1 %v1173_v43  ;;  %v46_v9 = vld [vmem:[%s1759_s2 + $0x50] sm:$0xff]  ;;  %v47_v10 = vld [vmem:[%s1759_s2 + $0x58] sm:$0xff]  ;;  %v1248_v13 = vpack.c.bf16 %v95_v2, %v94_v1  ;;  %v65_v18 = vld [vmem:[%s1759_s2 + $0xe8] sm:$0xff] }
  0x11   :  { %v78_v11 = vld [vmem:[%s1759_s2 + $0x150] sm:$0xff]  ;;  %v79_v14 = vld [vmem:[%s1759_s2 + $0x158] sm:$0xff]  ;;  %v96_v20 = vld [vmem:[%s1759_s2 + $0x1e0] sm:$0xff]  ;;  %v1268_v23 = vpack.c.bf16 %v47_v10, %v46_v9  ;;  %v1277_v28 = vpack.c.bf16 %v65_v18, %v64_v15 }
  0x12   :  { %811 = vmatpush3.bf16.msra.mxu0 %v1194_v53  ;;  %v97_v22 = vld [vmem:[%s1759_s2 + $0x1e8] sm:$0xff]  ;;  %v48_v24 = vld [vmem:[%s1759_s2 + $0x60] sm:$0xff]  ;;  %v1275_v27 = vpack.c.bf16 %v79_v14, %v78_v11  ;;  %v66_v36 = vld [vmem:[%s1759_s2 + $0xf0] sm:$0xff] }
  0x13   :  { %833 = vmatpush3.bf16.msra.mxu1 %v1198_v54  ;;  %812 = vmatprep.subr.bf16.mxu0 %v1200_v55  ;;  %v49_v29 = vld [vmem:[%s1759_s2 + $0x68] sm:$0xff]  ;;  %v80_v31 = vld [vmem:[%s1759_s2 + $0x160] sm:$0xff]  ;;  %v1289_v33 = vpack.c.bf16 %v97_v22, %v96_v20  ;;  %v67_v37 = vld [vmem:[%s1759_s2 + $0xf8] sm:$0xff] }
  0x14   :  { %834 = vmatprep.subr.bf16.mxu1 %v1212_v59  ;;  %v229_v32 = vld [vmem:[%s1757_s0] sm:$0xff]  ;;  %v81_v35 = vld [vmem:[%s1759_s2 + $0x168] sm:$0xff]  ;;  %v98_v42 = vld [vmem:[%s1759_s2 + $0x1f0] sm:$0xff]  ;;  %v1308_v45 = vpack.c.bf16 %v49_v29, %v48_v24  ;;  %v1315_v49 = vpack.c.bf16 %v67_v37, %v66_v36 }
  0x15   :  { %v240_v40 = vrot.slane %v229_v32, %v1259_v19  ;;  %v233_v41 = vcombine.high %v229_v32, %v229_v32  ;;  %v99_v44 = vld [vmem:[%s1759_s2 + $0x1f8] sm:$0xff]  ;;  %v1313_v48 = vpack.c.bf16 %v81_v35, %v80_v31  ;;  %v50_v50 = vld [vmem:[%s1759_s2 + $0x70] sm:$0xff]  ;;  %v116_v61 = vld [vmem:[%s1759_s2 + $0x280] sm:$0xff] }
  0x16   :  { %813 = vmatpush3.bf16.msra.mxu0 %v1230_v4  ;;  %v51_v51 = vld [vmem:[%s1759_s2 + $0x78] sm:$0xff]  ;;  %v82_v52 = vld [vmem:[%s1759_s2 + $0x170] sm:$0xff]  ;;  %v1327_v56 = vpack.c.bf16 %v99_v44, %v98_v42  ;;  %v117_v62 = vld [vmem:[%s1759_s2 + $0x288] sm:$0xff] }
  0x17   :  { %835 = vmatpush3.bf16.msra.mxu1 %v1234_v5  ;;  %814 = vmatprep.subr.bf16.mxu0 %v1236_v6  ;;  %v248_v46 = vcombine.high %v240_v40, %v240_v40  ;;  %v247_v47 = vrot.slane %v233_v41, %v1259_v19  ;;  %v83_v57 = vld [vmem:[%s1759_s2 + $0x178] sm:$0xff]  ;;  %v148_v63 = vld [vmem:[%s1759_s2 + $0x380] sm:$0xff]  ;;  %v149_v0 = vld [vmem:[%s1759_s2 + $0x388] sm:$0xff]  ;;  %v1345_v1 = vpack.c.bf16 %v51_v51, %v50_v50 }
  0x18   :  { %836 = vmatprep.subr.bf16.mxu1 %v1248_v13  ;;  %v1349_v9 = vpack.c.bf16 %v83_v57, %v82_v52  ;;  %v1351_v10 = vpack.c.bf16 %v117_v62, %v116_v61  ;;  %v100_v11 = vld [vmem:[%s1759_s2 + $0x200] sm:$0xff]  ;;  %v101_v14 = vld [vmem:[%s1759_s2 + $0x208] sm:$0xff]  ;;  %v1363_v18 = vpack.c.bf16 %v149_v0, %v148_v63  ;;  %v118_v22 = vld [vmem:[%s1759_s2 + $0x290] sm:$0xff]  ;;  %v275_v29 = vpack.c.bf16 %v240_v40, %v240_v40 }
  0x19   :  { %v276_v58 = vpack.c.bf16 %v248_v46, %v248_v46  ;;  %v249_v60 = vcombine.high %v247_v47, %v247_v47  ;;  %v132_v15 = vld [vmem:[%s1759_s2 + $0x300] sm:$0xff]  ;;  %v133_v20 = vld [vmem:[%s1759_s2 + $0x308] sm:$0xff]  ;;  %v119_v24 = vld [vmem:[%s1759_s2 + $0x298] sm:$0xff]  ;;  %v277_v35 = vpack.c.bf16 %v247_v47, %v247_v47  ;;  %v1381_v36 = vpack.c.bf16 %v101_v14, %v100_v11 }
  0x1a   :  { %815 = vmatpush3.bf16.msra.mxu0 %v1268_v23  ;;  %v150_v31 = vld [vmem:[%s1759_s2 + $0x390] sm:$0xff]  ;;  %v151_v32 = vld [vmem:[%s1759_s2 + $0x398] sm:$0xff]  ;;  %v1385_v37 = vpack.c.bf16 %v133_v20, %v132_v15  ;;  %v1387_v40 = vpack.c.bf16 %v119_v24, %v118_v22  ;;  %v120_v50 = vld [vmem:[%s1759_s2 + $0x2a0] sm:$0xff] }
  0x1b   :  { %837 = vmatpush3.bf16.msra.mxu1 %v1275_v27  ;;  %816 = vmatprep.subr.bf16.mxu0 %v1277_v28  ;;  %v278_v2 = vpack.c.bf16 %v249_v60, %v249_v60  ;;  %v102_v41 = vld [vmem:[%s1759_s2 + $0x210] sm:$0xff]  ;;  %v103_v42 = vld [vmem:[%s1759_s2 + $0x218] sm:$0xff]  ;;  %v1399_v46 = vpack.c.bf16 %v151_v32, %v150_v31  ;;  %v121_v51 = vld [vmem:[%s1759_s2 + $0x2a8] sm:$0xff] }
  0x1c   :  { %838 = vmatprep.subr.bf16.mxu1 %v1289_v33  ;;  %315 = vmatprep.mubr.bf16.mxu0 %v276_v58  ;;  %v134_v44 = vld [vmem:[%s1759_s2 + $0x310] sm:$0xff]  ;;  %v135_v47 = vld [vmem:[%s1759_s2 + $0x318] sm:$0xff]  ;;  %v152_v52 = vld [vmem:[%s1759_s2 + $0x3a0] sm:$0xff]  ;;  %v1417_v58 = vpack.c.bf16 %v103_v42, %v102_v41  ;;  %v1423_v61 = vpack.c.bf16 %v121_v51, %v120_v50 }
  0x1d   :  { %355 = vmatprep.mubr.bf16.mxu1 %v278_v2  ;;  %v153_v57 = vld [vmem:[%s1759_s2 + $0x3a8] sm:$0xff]  ;;  %v1421_v60 = vpack.c.bf16 %v135_v47, %v134_v44  ;;  %v104_v62 = vld [vmem:[%s1759_s2 + $0x220] sm:$0xff]  ;;  %v122_v14 = vld [vmem:[%s1759_s2 + $0x2b0] sm:$0xff] }
  0x1e   :  { %817 = vmatpush3.bf16.msra.mxu0 %v1308_v45  ;;  %v105_v63 = vld [vmem:[%s1759_s2 + $0x228] sm:$0xff]  ;;  %v136_v0 = vld [vmem:[%s1759_s2 + $0x320] sm:$0xff]  ;;  %v1435_v2 = vpack.c.bf16 %v153_v57, %v152_v52  ;;  %v123_v15 = vld [vmem:[%s1759_s2 + $0x2b8] sm:$0xff] }
  0x1f   :  { %839 = vmatpush3.bf16.msra.mxu1 %v1313_v48  ;;  %818 = vmatprep.subr.bf16.mxu0 %v1315_v49  ;;  %v137_v11 = vld [vmem:[%s1759_s2 + $0x328] sm:$0xff]  ;;  %v154_v20 = vld [vmem:[%s1759_s2 + $0x3b0] sm:$0xff]  ;;  %v155_v22 = vld [vmem:[%s1759_s2 + $0x3b8] sm:$0xff]  ;;  %v1453_v24 = vpack.c.bf16 %v105_v63, %v104_v62  ;;  %v1459_v31 = vpack.c.bf16 %v123_v15, %v122_v14 }
  0x20   :  { %840 = vmatprep.subr.bf16.mxu1 %v1327_v56  ;;  %v106_v32 = vld [vmem:[%s1759_s2 + $0x230] sm:$0xff]  ;;  %v1471_v42 = vpack.c.bf16 %v155_v22, %v154_v20  ;;  %v139_v44 = vld [vmem:[%s1759_s2 + $0x338] sm:$0xff]  ;;  %v124_v47 = vld [vmem:[%s1759_s2 + $0x2c0] sm:$0xff] }
  0x21   :  { %1775 = vst [vmem:[#allocation7_spill] sm:$0xff] %v1453_v24  ;;  %1777 = vst [vmem:[#allocation9_spill] sm:$0xff] %v1459_v31  ;;  %v138_v41 = vld [vmem:[%s1759_s2 + $0x330] sm:$0xff]  ;;  %v125_v50 = vld [vmem:[%s1759_s2 + $0x2c8] sm:$0xff] }
  0x22   :  { %819 = vmatpush3.bf16.msra.mxu0 %v1345_v1  ;;  %1778 = vst [vmem:[#allocation10_spill] sm:$0xff] %v1471_v42  ;;  %v156_v51 = vld [vmem:[%s1759_s2 + $0x3c0] sm:$0xff]  ;;  %v157_v52 = vld [vmem:[%s1759_s2 + $0x3c8] sm:$0xff] }
  0x23   :  { %841 = vmatpush3.bf16.msra.mxu1 %v1349_v9  ;;  %848 = vmatprep.subr.bf16.mxu0 %v1351_v10  ;;  %v230_v57 = vld [vmem:[%s1757_s0 + $0x8] sm:$0xff] }
  0x24   :  { %870 = vmatprep.subr.bf16.mxu1 %v1363_v18  ;;  %v1495_v63 = vrot.slane %v230_v57, %v1259_v19 }
  0x25   :  { %316 = vmatmul.mubr.bf16.vlgmr.msra.gmra.mrb[0].mxu0 %v275_v29  ;;  %v1457_v29 = vpack.c.bf16 %v137_v11, %v136_v0  ;;  %v250_v0 = vcombine.high %v230_v57, %v230_v57 }
  0x26   :  { %356 = vmatmul.mubr.bf16.vlgmr.msra.gmra.mrb[0].mxu1 %v277_v35  ;;  %849 = vmatpush3.bf16.msra.mxu0 %v1381_v36  ;;  %v107_v35 = vld [vmem:[%s1759_s2 + $0x238] sm:$0xff] }
  0x27   :  { %871 = vmatpush3.bf16.msra.mxu1 %v1385_v37  ;;  %850 = vmatprep.subr.bf16.mxu0 %v1387_v40  ;;  %1776 = vst [vmem:[#allocation8_spill] sm:$0xff] %v1457_v29  ;;  %v1492_v62 = vpack.c.bf16 %v107_v35, %v106_v32 }
  0x28   :  { %872 = vmatprep.subr.bf16.mxu1 %v1399_v46 }
  0x29   :  { %1779 = vst [vmem:[#allocation11_spill] sm:$0xff] %v1492_v62 }
  0x2a   :  { %851 = vmatpush3.bf16.msra.mxu0 %v1417_v58 }
  0x2b   :  { %873 = vmatpush3.bf16.msra.mxu1 %v1421_v60  ;;  %852 = vmatprep.subr.bf16.mxu0 %v1423_v61 }
  0x2c   :  { %874 = vmatprep.subr.bf16.mxu1 %v1435_v2 }
  0x2e   :  { %853 = vmatpush3.bf16.msra.mxu0 %v1453_v24 }
  0x2f   :  { %10 = vsyncpa [#allocation5], 0  ;;  %875 = vmatpush3.bf16.msra.mxu1 %v1457_v29  ;;  %854 = vmatprep.subr.bf16.mxu0 %v1459_v31  ;;  %v1499_v11 = vpack.c.bf16 %v139_v44, %v138_v41  ;;  %v1501_v14 = vpack.c.bf16 %v125_v50, %v124_v47  ;;  %v108_v15 = vld [vmem:[%s1759_s2 + $0x240] sm:$0xff]  ;;  %v109_v20 = vld [vmem:[%s1759_s2 + $0x248] sm:$0xff]  ;;  %v1513_v32 = vpack.c.bf16 %v157_v52, %v156_v51  ;;  %vm33_vm0 = vcmask 254976   ;;  %s1001_s8 = scalar_lea.hbm %s1762_s5, 16 }
  0x30   :  { %v140_v22 = vld [vmem:[%s1759_s2 + $0x340] sm:$0xff]  ;;  %876 = vmatprep.subr.bf16.mxu1 %v1471_v42  ;;  %v141_v35 = vld [vmem:[%s1759_s2 + $0x348] sm:$0xff]  ;;  %v126_v41 = vld [vmem:[%s1759_s2 + $0x2d0] sm:$0xff]  ;;  %v265_v47 = vcombine.high %v1495_v63, %v1495_v63  ;;  %v1527_v50 = vrot.slane %v250_v0, %v1259_v19  ;;  %v1536_v57 = vpack.c.bf16 %v109_v20, %v108_v15  ;;  %vm1015_vm1 = vmmov 0   ;;  %p1002_p0 = scmp.ne.s32.totalorder %s1762_s5, %s1001_s8  ;;  %p1005_p1 = scmp.lt.u32.totalorder %s1001_s8, %s1762_s5 }
  0x31   :  { %1780 = vst [vmem:[#allocation12_spill] sm:$0xff] %v1499_v11  ;;  %1781 = vst [vmem:[#allocation13_spill] sm:$0xff] %v1501_v14  ;;  %v127_v44 = vld [vmem:[%s1759_s2 + $0x2d8] sm:$0xff]  ;;  %v158_v51 = vld [vmem:[%s1759_s2 + $0x3d0] sm:$0xff]  ;;  %v1542_v0 = vpack.c.bf16 %v141_v35, %v140_v22  ;;  %vm693_vm2 = vcmask 1041408   ;;  %vm689_vm3 = vcmask 15360  }
  0x32   :  { %1782 = vst [vmem:[#allocation14_spill] sm:$0xff] %v1513_v32  ;;  %v159_v52 = vld [vmem:[%s1759_s2 + $0x3d8] sm:$0xff]  ;;  %855 = vmatpush3.bf16.msra.mxu0 %v1492_v62  ;;  %1783 = vst [vmem:[#allocation15_spill] sm:$0xff] %v1536_v57  ;;  %v280_v42 = vpack.c.bf16 %v265_v47, %v265_v47  ;;  %v266_v31 = vcombine.high %v1527_v50, %v1527_v50  ;;  %v1544_v29 = vpack.c.bf16 %v127_v44, %v126_v41  ;;  %v110_v24 = vld [vmem:[%s1759_s2 + $0x250] sm:$0xff]  ;;  %vm772_vm5 = vcmask 1024   ;;  %p1007_p2 = pnand %p1005_p1, %p1002_p0 }
  0x33   :  { %877 = vmatpush3.bf16.msra.mxu1 %v1499_v11  ;;  %856 = vmatprep.subr.bf16.mxu0 %v1501_v14  ;;  %1784 = vst [vmem:[#allocation16_spill] sm:$0xff] %v1542_v0  ;;  %v111_v15 = vld [vmem:[%s1759_s2 + $0x258] sm:$0xff]  ;;  %v142_v20 = vld [vmem:[%s1759_s2 + $0x350] sm:$0xff]  ;;  %v1556_v47 = vpack.c.bf16 %v159_v52, %v158_v51  ;;  %v128_v35 = vld [vmem:[%s1759_s2 + $0x2e0] sm:$0xff] }
  0x34   :  { %1785 = vst [vmem:[#allocation17_spill] sm:$0xff] %v1544_v29  ;;  %878 = vmatprep.subr.bf16.mxu1 %v1513_v32  ;;  %v143_v22 = vld [vmem:[%s1759_s2 + $0x358] sm:$0xff]  ;;  %v129_v41 = vld [vmem:[%s1759_s2 + $0x2e8] sm:$0xff]  ;;  %395 = vmatprep.mubr.bf16.mxu0 %v280_v42  ;;  %v282_v44 = vpack.c.bf16 %v266_v31, %v266_v31  ;;  %v160_v32 = vld [vmem:[%s1759_s2 + $0x3e0] sm:$0xff]  ;;  %v1574_v52 = vpack.c.bf16 %v111_v15, %v110_v24 }
  0x35   :  { %1786 = vst [vmem:[#allocation18_spill] sm:$0xff] %v1556_v47  ;;  %v161_v51 = vld [vmem:[%s1759_s2 + $0x3e8] sm:$0xff]  ;;  %v447_v14 = vld [vmem:[%s1758_s1] sm:$0xff]  ;;  %v1581_v31 = vpack.c.bf16 %v143_v22, %v142_v20  ;;  %v1583_v42 = vpack.c.bf16 %v129_v41, %v128_v35  ;;  %v130_v22 = vld [vmem:[%s1759_s2 + $0x2f0] sm:$0xff] }
  0x36   :  { %857 = vmatpush3.bf16.msra.mxu0 %v1536_v57  ;;  %435 = vmatprep.mubr.bf16.mxu1 %v282_v44  ;;  %v112_v11 = vld [vmem:[%s1759_s2 + $0x260] sm:$0xff]  ;;  %v113_v24 = vld [vmem:[%s1759_s2 + $0x268] sm:$0xff]  ;;  %v1595_v44 = vpack.c.bf16 %v161_v51, %v160_v32  ;;  %v131_v35 = vld [vmem:[%s1759_s2 + $0x2f8] sm:$0xff]  ;;  %v451_v51 = vcombine.high %v447_v14, %v447_v14 }
  0x37   :  { %879 = vmatpush3.bf16.msra.mxu1 %v1542_v0  ;;  %858 = vmatprep.subr.bf16.mxu0 %v1544_v29  ;;  %v144_v15 = vld [vmem:[%s1759_s2 + $0x360] sm:$0xff]  ;;  %v145_v20 = vld [vmem:[%s1759_s2 + $0x368] sm:$0xff]  ;;  %v162_v41 = vld [vmem:[%s1759_s2 + $0x3f0] sm:$0xff]  ;;  %v1619_v0 = vpack.c.bf16 %v131_v35, %v130_v22 }
  0x38   :  { %880 = vmatprep.subr.bf16.mxu1 %v1556_v47  ;;  %v163_v32 = vld [vmem:[%s1759_s2 + $0x3f8] sm:$0xff]  ;;  %v1613_v47 = vpack.c.bf16 %v113_v24, %v112_v11  ;;  %v1617_v29 = vpack.c.bf16 %v145_v20, %v144_v15  ;;  %v114_v57 = vld [vmem:[%s1759_s2 + $0x270] sm:$0xff]  ;;  %v1637_v20 = vrot.slane %v447_v14, %v1259_v19  ;;  %v1640_v22 = vrot.slane %v451_v51, %v1259_v19 }
  0x39   :  { %v115_v62 = vld [vmem:[%s1759_s2 + $0x278] sm:$0xff]  ;;  %v1628_v11 = vpack.c.bf16 %v163_v32, %v162_v41  ;;  %v146_v24 = vld [vmem:[%s1759_s2 + $0x370] sm:$0xff]  ;;  %v279_v14 = vpack.c.bf16 %v1495_v63, %v1495_v63 }
  0x3a   :  { %859 = vmatpush3.bf16.msra.mxu0 %v1574_v52  ;;  %v147_v15 = vld [vmem:[%s1759_s2 + $0x378] sm:$0xff]  ;;  %v1643_v35 = vpack.c.bf16 %v115_v62, %v114_v57  ;;  %v466_v32 = vcombine.high %v1637_v20, %v1637_v20  ;;  %v467_v51 = vcombine.high %v1640_v22, %v1640_v22  ;;  %v281_v62 = vpack.c.bf16 %v1527_v50, %v1527_v50 }
  0x3b   :  { %881 = vmatpush3.bf16.msra.mxu1 %v1581_v31  ;;  %860 = vmatprep.subr.bf16.mxu0 %v1583_v42  ;;  %v1647_v41 = vpack.c.bf16 %v147_v15, %v146_v24 }
  0x3c   :  { %882 = vmatprep.subr.bf16.mxu1 %v1595_v44  ;;  %v494_v57 = vpack.c.bf16 %v466_v32, %v466_v32  ;;  %v496_v24 = vpack.c.bf16 %v467_v51, %v467_v51 }
  0x3e   :  { %861 = vmatpush3.bf16.msra.mxu0 %v1613_v47 }
  0x3f   :  { %883 = vmatpush3.bf16.msra.mxu1 %v1617_v29  ;;  %862 = vmatprep.subr.bf16.mxu0 %v1619_v0 }
  0x40   :  { %884 = vmatprep.subr.bf16.mxu1 %v1628_v11 }
  0x42   :  { %863 = vmatpush3.bf16.msra.mxu0 %v1643_v35 }
  0x43   :  { %885 = vmatpush3.bf16.msra.mxu1 %v1647_v41  ;;  %892 = vmatprep.subr.bf16.mxu0 %v1056_v3  ;;  %v448_v3 = vld [vmem:[%s1758_s1 + $0x8] sm:$0xff] }
  0x44   :  { %914 = vmatprep.subr.bf16.mxu1 %v1067_v7  ;;  %v468_v7 = vcombine.high %v448_v3, %v448_v3 }
  0x45   :  { %396 = vmatmul.mubr.bf16.vlgmr.msra.gmra.mrb[4].mxu0 %v279_v14 }
  0x46   :  { %436 = vmatmul.mubr.bf16.vlgmr.msra.gmra.mrb[4].mxu1 %v281_v62  ;;  %893 = vmatpush3.bf16.msra.mxu0 %v1069_v8  ;;  %v475_v8 = vrot.slane %v448_v3, %v1259_v19 }
  0x47   :  { %915 = vmatpush3.bf16.msra.mxu1 %v1081_v12  ;;  %894 = vmatprep.subr.bf16.mxu0 %v1094_v16  ;;  %v482_v12 = vrot.slane %v468_v7, %v1259_v19 }
  0x48   :  { %916 = vmatprep.subr.bf16.mxu1 %v1096_v17  ;;  %533 = vmatprep.mubr.bf16.mxu0 %v494_v57  ;;  %v483_v16 = vcombine.high %v475_v8, %v475_v8  ;;  %v493_v17 = vpack.c.bf16 %v1637_v20, %v1637_v20  ;;  %v497_v19 = vpack.c.bf16 %v475_v8, %v475_v8 }
  0x49   :  { %573 = vmatprep.mubr.bf16.mxu1 %v496_v24 }
  0x4a   :  { %895 = vmatpush3.bf16.msra.mxu0 %v1108_v21  ;;  %v484_v21 = vcombine.high %v482_v12, %v482_v12 }
  0x4b   :  { %917 = vmatpush3.bf16.msra.mxu1 %v1121_v25  ;;  %896 = vmatprep.subr.bf16.mxu0 %v1123_v26  ;;  %v495_v25 = vpack.c.bf16 %v1640_v22, %v1640_v22  ;;  %v498_v26 = vpack.c.bf16 %v483_v16, %v483_v16 }
  0x4c   :  { %918 = vmatprep.subr.bf16.mxu1 %v1134_v30  ;;  %v500_v30 = vpack.c.bf16 %v484_v21, %v484_v21 }
  0x4e   :  { %897 = vmatpush3.bf16.msra.mxu0 %v1146_v34  ;;  %v1787_v34 = vld [vmem:[#allocation7_spill] sm:$0xff] }
  0x4f   :  { %919 = vmatpush3.bf16.msra.mxu1 %v1159_v38  ;;  %898 = vmatprep.subr.bf16.mxu0 %v1161_v39  ;;  %v1788_v38 = vld [vmem:[#allocation8_spill] sm:$0xff]  ;;  %v1789_v39 = vld [vmem:[#allocation9_spill] sm:$0xff] }
  0x50   :  { %920 = vmatprep.subr.bf16.mxu1 %v1173_v43  ;;  %v1790_v43 = vld [vmem:[#allocation10_spill] sm:$0xff] }
  0x52   :  { %899 = vmatpush3.bf16.msra.mxu0 %v1194_v53  ;;  %v1791_v53 = vld [vmem:[#allocation11_spill] sm:$0xff] }
  0x53   :  { %921 = vmatpush3.bf16.msra.mxu1 %v1198_v54  ;;  %900 = vmatprep.subr.bf16.mxu0 %v1200_v55  ;;  %v1792_v54 = vld [vmem:[#allocation12_spill] sm:$0xff]  ;;  %v1793_v55 = vld [vmem:[#allocation13_spill] sm:$0xff] }
  0x54   :  { %922 = vmatprep.subr.bf16.mxu1 %v1212_v59  ;;  %v1794_v59 = vld [vmem:[#allocation14_spill] sm:$0xff] }
  0x56   :  { %901 = vmatpush3.bf16.msra.mxu0 %v1230_v4  ;;  %v1795_v4 = vld [vmem:[#allocation15_spill] sm:$0xff] }
  0x57   :  { %923 = vmatpush3.bf16.msra.mxu1 %v1234_v5  ;;  %902 = vmatprep.subr.bf16.mxu0 %v1236_v6  ;;  %v1796_v5 = vld [vmem:[#allocation16_spill] sm:$0xff]  ;;  %v1797_v6 = vld [vmem:[#allocation17_spill] sm:$0xff] }
  0x58   :  { %924 = vmatprep.subr.bf16.mxu1 %v1248_v13  ;;  %v1798_v13 = vld [vmem:[#allocation18_spill] sm:$0xff] }
  0x5a   :  { %903 = vmatpush3.bf16.msra.mxu0 %v1268_v23  ;;  %v499_v23 = vpack.c.bf16 %v482_v12, %v482_v12 }
  0x5b   :  { %925 = vmatpush3.bf16.msra.mxu1 %v1275_v27  ;;  %904 = vmatprep.subr.bf16.mxu0 %v1277_v28  ;;  %v801_v27 = vld [vmem:[%s1760_s3] ss:$0 sm:$0xff]  ;;  %v1014_v28 = vmov 0.0  }
  0x5c   :  { %926 = vmatprep.subr.bf16.mxu1 %v1289_v33  ;;  %34 = vst.msk [vmem:[#allocation2] sm:$0x3] %vm33_vm0, %v801_v27  ;;  %35 = vst.msk [vmem:[#allocation3] sm:$0x3] %vm33_vm0, %v801_v27 }
  0x5e   :  { %905 = vmatpush3.bf16.msra.mxu0 %v1308_v45 }
  0x5f   :  { %927 = vmatpush3.bf16.msra.mxu1 %v1313_v48  ;;  %906 = vmatprep.subr.bf16.mxu0 %v1315_v49 }
  0x60   :  { %928 = vmatprep.subr.bf16.mxu1 %v1327_v56 }
  0x62   :  { %907 = vmatpush3.bf16.msra.mxu0 %v1345_v1 }
  0x63   :  { %929 = vmatpush3.bf16.msra.mxu1 %v1349_v9  ;;  %936 = vmatprep.subr.bf16.mxu0 %v1351_v10 }
  0x64   :  { %958 = vmatprep.subr.bf16.mxu1 %v1363_v18 }
  0x65   :  { %534 = vmatmul.mubr.bf16.vlgmr.msra.gmra.mrb[8].mxu0 %v493_v17 }
  0x66   :  { %937 = vmatpush3.bf16.msra.mxu0 %v1381_v36  ;;  %574 = vmatmul.mubr.bf16.vlgmr.msra.gmra.mrb[8].mxu1 %v495_v25 }
  0x67   :  { %959 = vmatpush3.bf16.msra.mxu1 %v1385_v37  ;;  %938 = vmatprep.subr.bf16.mxu0 %v1387_v40 }
  0x68   :  { %960 = vmatprep.subr.bf16.mxu1 %v1399_v46  ;;  %613 = vmatprep.mubr.bf16.mxu0 %v498_v26 }
  0x69   :  { %653 = vmatprep.mubr.bf16.mxu1 %v500_v30 }
  0x6a   :  { %939 = vmatpush3.bf16.msra.mxu0 %v1417_v58 }
  0x6b   :  { %961 = vmatpush3.bf16.msra.mxu1 %v1421_v60  ;;  %940 = vmatprep.subr.bf16.mxu0 %v1423_v61 }
  0x6c   :  { %962 = vmatprep.subr.bf16.mxu1 %v1435_v2 }
  0x6e   :  { %941 = vmatpush3.bf16.msra.mxu0 %v1787_v34 }
  0x6f   :  { %963 = vmatpush3.bf16.msra.mxu1 %v1788_v38  ;;  %942 = vmatprep.subr.bf16.mxu0 %v1789_v39  ;;  %v446_v38 = vld [vmem:[#allocation3] sm:$0x3] }
  0x70   :  { %964 = vmatprep.subr.bf16.mxu1 %v1790_v43 }
  0x72   :  { %943 = vmatpush3.bf16.msra.mxu0 %v1791_v53 }
  0x73   :  { %965 = vmatpush3.bf16.msra.mxu1 %v1792_v54  ;;  %944 = vmatprep.subr.bf16.mxu0 %v1793_v55 }
  0x74   :  { %966 = vmatprep.subr.bf16.mxu1 %v1794_v59 }
  0x76   :  { %945 = vmatpush3.bf16.msra.mxu0 %v1795_v4 }
  0x77   :  { %967 = vmatpush3.bf16.msra.mxu1 %v1796_v5  ;;  %946 = vmatprep.subr.bf16.mxu0 %v1797_v6 }
  0x78   :  { %968 = vmatprep.subr.bf16.mxu1 %v1798_v13 }
  0x7a   :  { %947 = vmatpush3.bf16.msra.mxu0 %v1574_v52  ;;  %v228_v52 = vld [vmem:[#allocation2] sm:$0x3] }
  0x7b   :  { %969 = vmatpush3.bf16.msra.mxu1 %v1581_v31  ;;  %948 = vmatprep.subr.bf16.mxu0 %v1583_v42 }
  0x7c   :  { %970 = vmatprep.subr.bf16.mxu1 %v1595_v44  ;;  %v688_v44 = vld [vmem:[%s1761_s4] sm:$0x3] }
  0x7e   :  { %949 = vmatpush3.bf16.msra.mxu0 %v1613_v47 }
  0x7f   :  { %971 = vmatpush3.bf16.msra.mxu1 %v1617_v29  ;;  %950 = vmatprep.subr.bf16.mxu0 %v1619_v0 }
  0x80   :  { %972 = vmatprep.subr.bf16.mxu1 %v1628_v11 }
  0x82   :  { %951 = vmatpush3.bf16.msra.mxu0 %v1643_v35 }
  0x83   :  { %973 = vmatpush3.bf16.msra.mxu1 %v1647_v41  ;;  %982 = vmatprep.subr.mxu0 %v1014_v28 }
  0x85   :  { %614 = vmatmul.mubr.bf16.vlgmr.msra.gmra.mrb[12].mxu0 %v497_v19 }
  0x86   :  { %654 = vmatmul.mubr.bf16.vlgmr.msra.gmra.mrb[12].mxu1 %v499_v23  ;;  %984 = vmatprep.mubr.msk.f32.mxu0 %vm1015_vm1, %v1014_v28 }
  0xf8   :  { %v820_v33 = vpop.f32.mrb[0].mxu0 }
  0xf9   :  { %v842_v45 = vpop.f32.mrb[0].mxu1  ;;  %v821_v48 = vpop.f32.mrb[1].mxu0 }
  0xfa   :  { %v822_v49 = vadd.f32 %v821_v48, %v820_v33  ;;  %v843_v56 = vpop.f32.mrb[1].mxu1  ;;  %v823_v1 = vpop.f32.mrb[2].mxu0 }
  0xfb   :  { %v844_v9 = vadd.f32 %v843_v56, %v842_v45  ;;  %v845_v10 = vpop.f32.mrb[2].mxu1  ;;  %v824_v18 = vpop.f32.mrb[3].mxu0 }
  0xfc   :  { %v846_v36 = vpop.f32.mrb[3].mxu1 }
  0xfd   :  { %v358_v37 = vadd.f32 %v844_v9, %v822_v49 }
 0x118   :  { %v864_v40 = vpop.f32.mrb[4].mxu0 }
 0x119   :  { %v886_v46 = vpop.f32.mrb[4].mxu1  ;;  %v865_v58 = vpop.f32.mrb[5].mxu0 }
 0x11a   :  { %v866_v60 = vadd.f32 %v865_v58, %v864_v40  ;;  %v887_v61 = vpop.f32.mrb[5].mxu1  ;;  %v867_v2 = vpop.f32.mrb[6].mxu0 }
 0x11b   :  { %v888_v29 = vadd.f32 %v887_v61, %v886_v46  ;;  %v889_v63 = vpop.f32.mrb[6].mxu1  ;;  %v868_v50 = vpop.f32.mrb[7].mxu0 }
 0x11c   :  { %v398_v0 = vadd.f32 %v866_v60, %v358_v37  ;;  %v890_v47 = vpop.f32.mrb[7].mxu1 }
 0x11e   :  { %v438_v31 = vadd.f32 %v888_v29, %v398_v0 }
 0x120   :  { %v443_v42 = vadd.f32 %v438_v31, %v228_v52 }
 0x122   :  { %445 = vst.msk [vmem:[#allocation2] sm:$0x3] %vm33_vm0, %v443_v42 }
 0x129   :  { %v666_v11 = vld [vmem:[#allocation2] sm:$0x3] }
 0x12a   :  { %983 = vmatpush3.msk.msra.mxu0 %vm693_vm2, %v666_v11 }
 0x12b   :  { %985 = vmatmul.mubr.msk.f32.vlgmr.msra.gmra.mrb[16].mxu0 %vm689_vm3, %v688_v44 }
 0x138   :  { %v908_v15 = vpop.f32.mrb[8].mxu0 }
 0x139   :  { %v909_v20 = vpop.f32.mrb[9].mxu0  ;;  %v930_v22 = vpop.f32.mrb[8].mxu1 }
 0x13a   :  { %v910_v35 = vadd.f32 %v909_v20, %v908_v15  ;;  %v911_v41 = vpop.f32.mrb[10].mxu0  ;;  %v931_v32 = vpop.f32.mrb[9].mxu1 }
 0x13b   :  { %v912_v14 = vpop.f32.mrb[11].mxu0  ;;  %v932_v51 = vadd.f32 %v931_v32, %v930_v22  ;;  %v933_v62 = vpop.f32.mrb[10].mxu1 }
 0x13c   :  { %v934_v57 = vpop.f32.mrb[11].mxu1 }
 0x13d   :  { %v576_v24 = vadd.f32 %v932_v51, %v910_v35 }
 0x158   :  { %v952_v3 = vpop.f32.mrb[12].mxu0 }
 0x159   :  { %v953_v7 = vpop.f32.mrb[13].mxu0  ;;  %v974_v8 = vpop.f32.mrb[12].mxu1 }
 0x15a   :  { %v954_v12 = vadd.f32 %v953_v7, %v952_v3  ;;  %v975_v16 = vpop.f32.mrb[13].mxu1  ;;  %v955_v17 = vpop.f32.mrb[14].mxu0 }
 0x15b   :  { %v976_v21 = vadd.f32 %v975_v16, %v974_v8  ;;  %v956_v25 = vpop.f32.mrb[15].mxu0  ;;  %v977_v26 = vpop.f32.mrb[14].mxu1 }
 0x15c   :  { %v616_v30 = vadd.f32 %v954_v12, %v576_v24  ;;  %v978_v34 = vpop.f32.mrb[15].mxu1 }
 0x15e   :  { %v656_v39 = vadd.f32 %v976_v21, %v616_v30 }
 0x160   :  { %v661_v43 = vadd.f32 %v656_v39, %v446_v38 }
 0x162   :  { %662 = vst.msk [vmem:[#allocation3] sm:$0x3] %vm33_vm0, %v661_v43 }
 0x169   :  { %v667_v53 = vld [vmem:[#allocation3] sm:$0x3] }
 0x16a   :  { %v668_v54 = vmul.f32 %v667_v53, %v666_v11 }
 0x16c   :  { %v669_v55 = vsel %vm33_vm0, %v668_v54, 0.0 }
 0x16d   :  { %670 = vadd.xlane.f32.xlu0 %v669_v55 }
 0x1fa   :  { %v671_v13 = vpop.xlane.xlu0 %670 }
 0x1fb   :  { %v673_v19 = vand.u32 2147483647, %v671_v13  ;;  %v672_v18 = vmin.f32 %v671_v13, 0.0 }
 0x1fd   :  { %v674_v23 = vsub.f32 0.0, %v673_v19 }
 0x1fe   :  { %v763_v59 = vpop.f32.mrb[16].mxu0 }
 0x1ff   :  { %v767_v4 = vmul.f32 %v763_v59, %v666_v11  ;;  %v986_v5 = vpop.f32.mrb[17].mxu0  ;;  %v675_v27 = vmul.f32 1.442695, %v674_v23 }
 0x201   :  { %v768_v6 = vsel %vm33_vm0, %v767_v4, 0.0  ;;  %997 = vpow2.f32 %v675_v27 }
 0x202   :  { %769 = vadd.xlane.f32.xlu0 %v768_v6 }
 0x20b   :  { %v998_v28 = vpop.eup %997 }
 0x20c   :  { %v677_v33 = vadd.f32 1.0, %v998_v28  ;;  %v680_v45 = vmul.f32 -0.5, %v998_v28  ;;  %v683_v56 = vand.u32 2147483647, %v998_v28 }
 0x20e   :  { %999 = vlog2.f32 %v677_v33  ;;  %v681_v49 = vadd.f32 1.0, %v680_v45  ;;  %vm684_vm4 = vcmp.lt.f32.partialorder %v683_v56, 0.0004427343 }
 0x210   :  { %v682_v9 = vmul.f32 %v998_v28, %v681_v49 }
 0x218   :  { %v1000_v48 = vpop.eup %999 }
 0x219   :  { %v679_v1 = vmul.f32 0.6931472, %v1000_v48 }
 0x21b   :  { %v685_v10 = vsel %vm684_vm4, %v682_v9, %v679_v1 }
 0x21c   :  { %v686_v36 = vsub.f32 %v672_v18, %v685_v10 }
 0x21e   :  { %v687_v37 = vsub.f32 0.0, %v686_v36 }
 0x28f   :  { %v770_v40 = vpop.xlane.xlu0 %769 }
 0x290   :  { %v771_v46 = vadd.f32 %v770_v40, %v687_v37 }
 0x292   :  { %v773_v58 = vsel %vm772_vm5, %v771_v46, 0.0 }
 0x293   :  { %774 = vadd.xlane.f32.xlu1 %v773_v58 }
 0x320   :  { %v775_v60 = vpop.xlane.xlu1 %774 }
 0x321   :  { %v776_v61 = vrot.slane %v775_v60, 4 }
 0x323   :  { %v777_v2 = vadd.f32 %v776_v61, %v775_v60 }
 0x325   :  { %v778_v29 = vrot.slane %v777_v2, 2 }
 0x327   :  { %v779_v63 = vadd.f32 %v778_v29, %v777_v2 }
 0x329   :  { %v780_v50 = vrot.slane %v779_v63, 1 }
 0x32b   :  { %v781_v0 = vadd.f32 %v780_v50, %v779_v63 }
 0x32d   :  { %987 = vpush %v781_v0 }
 0x35e   :  { %s988_s4 = spop %987 }
 0x35f   :  { %s785_s30 = smul.f32 0.5, %s988_s4 }
 0x361   :  { %787 = sst [smem:[#allocation4]] %s785_s30 }
 0x362   :  { %1010 = shalt.err (!%p1007_p2)
}
 0x363   :  { %s1016_s13 = smov [#allocation4]  }
 0x364   :  { %795 = dma.smem_to_hbm %s1016_s13, 16, %s1762_s5, [#allocation5]  }
 0x365   :  { %1011 = dma.done.wait [#allocation5], 16  }
 0x366   :  { %1012 = vsyncadd [#allocation5], 4294967280 }
 0x367   :  { %799 = sfence }
 0x368   :  { %800 = vsyncpa [#allocation5], 1 }

</bundles_post_ra>
